<compile_context>
chip_gen: v7x
topology: tpu7x:2x2x1
jax: 0.10.0
libtpu: 0.0.40
codegen_flags: <defaults>
</compile_context>

<pallas_src>
import jax
import jax.numpy as jnp
from jax.experimental import pallas as pl
from jax.experimental.pallas import tpu as pltpu


def _mol_weight_kernel(params_ref, m_ref, o_ref):
    """Fused MolWeight forward (elementwise over M).

    params_ref: SMEM (5,) f32 -> [alpha_1, 0.5*(alpha_1-alpha_2), 0.5*beta, Mcr, k_1]
    m_ref / o_ref: lane-dense VMEM tiles in the caller's dtype.
    """
    alpha_1 = params_ref[0]
    half_dalpha = params_ref[1]   # 0.5 * (alpha_1 - alpha_2)
    half_beta = params_ref[2]     # 0.5 * beta
    mcr = params_ref[3]
    k_1 = params_ref[4]

    # Compute in f32 in-register; I/O stays in the original dtype.
    m = m_ref[...].astype(jnp.float32)
    d = mcr - m
    t = jnp.tanh(half_beta * d)                 # EUP slot; hw = 0.5*(1 - t)
    f = k_1 + alpha_1 * m + half_dalpha * d * (1.0 - t)
    o_ref[...] = f.astype(o_ref.dtype)


_TARGET_BLOCK_BYTES = 8 * 1024 * 1024     # per-buffer input bytes per grid step
_SMALL_SINGLE_BLOCK_BYTES = 512 * 1024    # below this, one full-array block
_MIN_GRID_STEPS = 4                       # let v7x megacore shard mid-size inputs
_VMEM_LIMIT_BYTES = 48 << 20              # 2x2x8 MiB buffers = 32 MiB; 48 MiB
                                          # leaves headroom and is < v7x's 64 MiB


def mol_weight(M, alpha_1, alpha_2, beta, Mcr, k_1):
    """MolWeight forward as a single fused Pallas TPU kernel."""
    # TODO(synk): the PyTorch module's host-side diagnostic print when
    # (f_M > 4).any() is logging-only and omitted; the returned value is identical.
    orig_shape = M.shape
    orig_dtype = M.dtype
    n = M.size
    if n == 0:
        return M

    a1 = jnp.asarray(alpha_1, jnp.float32)
    a2 = jnp.asarray(alpha_2, jnp.float32)
    params = jnp.stack([
        a1,
        0.5 * (a1 - a2),
        0.5 * jnp.asarray(beta, jnp.float32),
        jnp.asarray(Mcr, jnp.float32),
        jnp.asarray(k_1, jnp.float32),
    ])

    m1d = M.reshape(-1)

    # Widest lane-dense slab width (multiple of 128) that divides n exactly:
    # fat unmasked DMAs/stores and a copy-free wrapper for the common case.
    # Misaligned n falls back to 128 lanes + one tail pad/slice (unavoidable
    # extra HBM round trip for the reshape).
    lane = 128
    for w in (2048, 1024, 512, 256, 128):
        if n % w == 0:
            lane = w
            break
    pad = (-n) % lane
    if pad:
        m1d = jnp.pad(m1d, (0, pad))
    rows = m1d.shape[0] // lane
    m2d = m1d.reshape(rows, lane)

    itemsize = jnp.dtype(orig_dtype).itemsize
    bytes_per_row = lane * itemsize
    total_bytes = rows * bytes_per_row

    if total_bytes <= _SMALL_SINGLE_BLOCK_BYTES or rows <= 8:
        # Tiny input: a single full-array block (block_shape == array dims, so
        # no (8,128) divisibility requirement); launch/DMA overhead is minimal.
        tile_rows = rows
    else:
        # ~8 MiB blocks, sublane-aligned.
        target_rows = max(8, (_TARGET_BLOCK_BYTES // bytes_per_row) // 8 * 8)
        # At least _MIN_GRID_STEPS blocks so dimension_semantics=("parallel",)
        # can shard the grid across v7x's two TensorCores for mid-size inputs.
        want = -(-rows // _MIN_GRID_STEPS)
        want = -(-want // 8) * 8
        tile_rows = max(8, min(target_rows, want))
    grid = pl.cdiv(rows, tile_rows)   # ragged last row block masked by Pallas

    out2d = pl.pallas_call(
        _mol_weight_kernel,
        out_shape=jax.ShapeDtypeStruct((rows, lane), orig_dtype),
        grid_spec=pltpu.PrefetchScalarGridSpec(
            num_scalar_prefetch=0,
            grid=(grid,),
            in_specs=[
                pl.BlockSpec(memory_space=pltpu.MemorySpace.SMEM),
                pl.BlockSpec((tile_rows, lane), lambda i: (i, 0)),
            ],
            out_specs=pl.BlockSpec((tile_rows, lane), lambda i: (i, 0)),
        ),
        compiler_params=pltpu.CompilerParams(
            dimension_semantics=("parallel",),
            vmem_limit_bytes=_VMEM_LIMIT_BYTES,
        ),
    )(params, m2d)

    out = out2d.reshape(-1)
    if pad:
        out = out[:n]
    return out.reshape(orig_shape)


if __name__ == "__main__":
    key = jax.random.PRNGKey(0)
    k_main, k_misaligned = jax.random.split(key)
    alpha_1, alpha_2, beta, Mcr, k_1 = 0.6, 0.3, 2.5, 0.1, 0.5

    def reference(M):
        # Plain JAX mirror of the PyTorch module.
        low_mw = k_1 + alpha_1 * M
        k_2 = k_1 + (alpha_1 - alpha_2) * Mcr
        high_mw = k_2 + alpha_2 * M
        hw = 1.0 / (1.0 + jnp.exp(-beta * (M - Mcr)))
        lw = 1.0 / (1.0 + jnp.exp(-beta * (Mcr - M)))
        return low_mw * lw + high_mw * hw

    # Main case: small 4-D tensor (2048 elems, lane-aligned -> copy-free path).
    M = jax.random.normal(k_main, (2, 4, 16, 16), dtype=jnp.float32)
    f_M = jax.block_until_ready(mol_weight(M, alpha_1, alpha_2, beta, Mcr, k_1))
    assert f_M.shape == M.shape and f_M.dtype == M.dtype
    assert jnp.allclose(f_M, reference(M), atol=1e-5, rtol=1e-5), "mismatch (aligned)"

    # Misaligned case (n % 128 != 0) exercises the lane-pad fallback path.
    M2 = jax.random.normal(k_misaligned, (5, 250), dtype=jnp.float32)
    f_M2 = jax.block_until_ready(mol_weight(M2, alpha_1, alpha_2, beta, Mcr, k_1))
    assert f_M2.shape == M2.shape and f_M2.dtype == M2.dtype
    assert jnp.allclose(f_M2, reference(M2), atol=1e-5, rtol=1e-5), "mismatch (ragged)"

    print("KERNEL_OK")
</pallas_src>

<mosaic_0001>
module attributes {stable_mosaic.version = 11 : i64} {
  func.func @_mol_weight_kernel(%arg0: i32, %arg1: memref<5xf32, #tpu.memory_space<smem>>, %arg2: memref<1x2048xf32, #tpu.memory_space<vmem>>, %arg3: memref<1x2048xf32, #tpu.memory_space<vmem>>) attributes {dimension_semantics = [#tpu.dimension_semantics<parallel>], iteration_bounds = array<i64: 1>, scalar_prefetch = 0 : i64, scratch_operands = 0 : i64, tpu.core_type = #tpu.core_type<tc>, window_params = [{transform_indices = @transform_0, window_bounds = array<i64: 5>}, {transform_indices = @transform_1, window_bounds = array<i64: 1, 2048>}, {transform_indices = @transform_2, window_bounds = array<i64: 1, 2048>}]} {
    %c0 = arith.constant 0 : index
    %0 = memref.load %arg1[%c0] : memref<5xf32, #tpu.memory_space<smem>>
    %c1 = arith.constant 1 : index
    %1 = memref.load %arg1[%c1] : memref<5xf32, #tpu.memory_space<smem>>
    %c2 = arith.constant 2 : index
    %2 = memref.load %arg1[%c2] : memref<5xf32, #tpu.memory_space<smem>>
    %c3 = arith.constant 3 : index
    %3 = memref.load %arg1[%c3] : memref<5xf32, #tpu.memory_space<smem>>
    %c4 = arith.constant 4 : index
    %4 = memref.load %arg1[%c4] : memref<5xf32, #tpu.memory_space<smem>>
    %c0_0 = arith.constant 0 : index
    %c0_1 = arith.constant 0 : index
    %5 = vector.load %arg2[%c0_0, %c0_1] : memref<1x2048xf32, #tpu.memory_space<vmem>>, vector<1x2048xf32>
    %6 = vector.broadcast %3 : f32 to vector<1x2048xf32>
    %7 = arith.subf %6, %5 : vector<1x2048xf32>
    %8 = vector.broadcast %2 : f32 to vector<1x2048xf32>
    %9 = arith.mulf %8, %7 : vector<1x2048xf32>
    %10 = math.tanh %9 : vector<1x2048xf32>
    %11 = vector.broadcast %0 : f32 to vector<1x2048xf32>
    %12 = arith.mulf %11, %5 : vector<1x2048xf32>
    %13 = vector.broadcast %4 : f32 to vector<1x2048xf32>
    %14 = arith.addf %13, %12 : vector<1x2048xf32>
    %15 = vector.broadcast %1 : f32 to vector<1x2048xf32>
    %16 = arith.mulf %15, %7 : vector<1x2048xf32>
    %cst = arith.constant 1.000000e+00 : f32
    %17 = vector.broadcast %cst : f32 to vector<1x2048xf32>
    %18 = arith.subf %17, %10 : vector<1x2048xf32>
    %19 = arith.mulf %16, %18 : vector<1x2048xf32>
    %20 = arith.addf %14, %19 : vector<1x2048xf32>
    %c0_2 = arith.constant 0 : index
    %c0_3 = arith.constant 0 : index
    %21 = vector.load %arg3[%c0_2, %c0_3] : memref<1x2048xf32, #tpu.memory_space<vmem>>, vector<1x2048xf32>
    tpu.vector_store %arg3[%c0_2, %c0_3], %20 {strides = array<i32>} : memref<1x2048xf32, #tpu.memory_space<vmem>>, vector<1x2048xf32>,
    return
  }
  func.func @transform_0(%arg0: i32) -> i32 {
    %c0_i32 = arith.constant 0 : i32
    %c0_i32_0 = arith.constant 0 : i32
    return %c0_i32 : i32
  }
  func.func @transform_1(%arg0: i32) -> (i32, i32) {
    %c0_i32 = arith.constant 0 : i32
    %c0_i32_0 = arith.constant 0 : i32
    return %arg0, %c0_i32 : i32, i32
  }
  func.func @transform_2(%arg0: i32) -> (i32, i32) {
    %c0_i32 = arith.constant 0 : i32
    %c0_i32_0 = arith.constant 0 : i32
    return %arg0, %c0_i32 : i32, i32
  }
}

</mosaic_0001>

<bundles_post_ra>
// kernel: tpu_custom_call.1
= control target key start
LH: loop header
LB: loop body
LE: loop exit
PB: predicated region body
PF: predicated region fallthrough
CT: control target
= control target key end

     0   :  { %7 = vsyncpa [#allocation5], 0  ;;  %s208_s0 = inlined_call_operand.hbm [shape: f32[5], index: 0, kind: input, shape index: {}]   ;;  %s209_s1 = inlined_call_operand.hbm [shape: f32[1,2048], index: 1, kind: input, shape index: {}]   ;;  %s210_s2 = inlined_call_operand.hbm [shape: f32[1,2048], index: 2, kind: output, shape index: {}]  }
   0x1   :  { %8 = vsyncpa [#allocation3], 0 }
   0x2   :  { %9 = vsyncpa [#allocation4], 0  ;;  %s94_s11 = scalar_lea.hbm %s208_s0, 16 }
   0x3   :  { %p95_p0 = scmp.ne.s32.totalorder %s208_s0, %s94_s11  ;;  %p98_p1 = scmp.lt.u32.totalorder %s94_s11, %s208_s0 }
   0x5   :  { %p100_p2 = pnand %p98_p1, %p95_p0 }
   0x7   :  { %103 = shalt.err (!%p100_p2)
}
   0x8   :  { %s154_s16 = smov [#allocation2]   ;;  %s155_s19 = smov [#allocation6]  }
   0x9   :  { %17 = dma.hbm_to_smem %s208_s0, 16, %s154_s16, [#allocation5]  }
   0xa   :  { %s24_s20 = sshll.u32 %s155_s19, 4  ;;  %s104_s23 = scalar_lea.hbm %s209_s1, 256  ;;  %s25_s20 = int_to_ptr.vmem [resolvable:$true] %s24_s20 }
   0xb   :  { %p105_p3 = scmp.ne.s32.totalorder %s209_s1, %s104_s23  ;;  %p108_p4 = scmp.lt.u32.totalorder %s104_s23, %s209_s1 }
   0xd   :  { %p110_p5 = pnand %p108_p4, %p105_p3 }
   0xf   :  { %113 = shalt.err (!%p110_p5)
}
  0x10   :  { %s114_s28 = scalar_lea.vmem %s25_s20, 256  ;;  %p119_p7 = scmp.lt.s32.totalorder %s25_s20, %s25_s20 }
  0x11   :  { %p115_p6 = scmp.ne.s32.totalorder %s25_s20, %s114_s28  ;;  %p120_p8 = scmp.lt.s32.totalorder %s114_s28, %s114_s28 }
  0x13   :  { %p121_p9 = por %p120_p8, %p119_p7 }
  0x15   :  { %p122_p10 = pnand %p121_p9, %p115_p6 }
  0x17   :  { %125 = shalt.err (!%p122_p10)
}
  0x18   :  { %27 = dma.hbm_to_vmem [thread:$0]  %s209_s1, 256, %s25_s20, [#allocation3]  }
  0x19   :  { %148 = dma.done.wait [#allocation5], 16  }
  0x1a   :  { %149 = vsyncadd [#allocation5], 4294967280 }
  0x1b   :  { %150 = dma.done.wait [#allocation3], 256  }
  0x1c   :  { %151 = vsyncadd [#allocation3], 4294967040 }
  0x1d   :  { %34 = sfence }
  0x1e   :  { %s84_s30 = sld [smem:[#allocation2 + $0x2]]  ;;  %s85_s3 = sld [smem:[#allocation2 + $0x3]]  ;;  %v40_v0 = vld [vmem:[#allocation6] sm:$0xff]  ;;  %v41_v1 = vld [vmem:[#allocation6 + $0x8] sm:$0xff] }
  0x1f   :  { %s35_s4 = sld [smem:[#allocation2]]  ;;  %s83_s5 = sld [smem:[#allocation2 + $0x1]] }
  0x20   :  { %s86_s6 = sld [smem:[#allocation2 + $0x4]]  ;;  %s156_s1 = smov [#allocation7]  }
  0x21   :  { %s73_s7 = sshll.u32 %s156_s1, 4  ;;  %s74_s7 = int_to_ptr.vmem [resolvable:$true] %s73_s7 }
  0x22   :  { %s126_s8 = scalar_lea.vmem %s74_s7, 256  ;;  %p131_p12 = scmp.lt.s32.totalorder %s74_s7, %s74_s7 }
  0x23   :  { %p127_p11 = scmp.ne.s32.totalorder %s74_s7, %s126_s8  ;;  %p132_p13 = scmp.lt.s32.totalorder %s126_s8, %s126_s8 }
  0x24   :  { %v42_v2 = vstv %s85_s3  ;;  %v45_v3 = vstv %s84_s30 }
  0x25   :  { %v43_v4 = vsub.f32 %v42_v2, %v40_v0  ;;  %v44_v5 = vsub.f32 %v42_v2, %v41_v1  ;;  %v50_v8 = vstv %s35_s4  ;;  %v56_v9 = vstv %s83_s5  ;;  %p133_p0 = por %p132_p13, %p131_p12 }
  0x26   :  { %v51_v10 = vmul.f32 %v50_v8, %v40_v0  ;;  %v53_v11 = vstv %s86_s6  ;;  %v52_v12 = vmul.f32 %v50_v8, %v41_v1 }
  0x27   :  { %v46_v6 = vmul.f32 %v45_v3, %v43_v4  ;;  %v47_v7 = vmul.f32 %v45_v3, %v44_v5  ;;  %v57_v13 = vmul.f32 %v56_v9, %v43_v4  ;;  %v58_v15 = vmul.f32 %v56_v9, %v44_v5  ;;  %p134_p1 = pnand %p133_p0, %p127_p11 }
  0x28   :  { %v54_v17 = vadd.f32 %v53_v11, %v51_v10  ;;  %v55_v19 = vadd.f32 %v53_v11, %v52_v12 }
  0x29   :  { %90 = vtanh.f32 %v46_v6 }
  0x2a   :  { %92 = vtanh.f32 %v47_v7 }
  0x33   :  { %v91_v14 = vpop.eup %90 }
  0x34   :  { %v93_v16 = vpop.eup %92  ;;  %v59_v18 = vsub.f32 1.0, %v91_v14 }
  0x35   :  { %v60_v20 = vsub.f32 1.0, %v93_v16 }
  0x36   :  { %v61_v21 = vmul.f32 %v59_v18, %v57_v13 }
  0x37   :  { %v62_v22 = vmul.f32 %v60_v20, %v58_v15 }
  0x38   :  { %v63_v23 = vadd.f32 %v61_v21, %v54_v17 }
  0x39   :  { %v64_v24 = vadd.f32 %v62_v22, %v55_v19 }
  0x3a   :  { %65 = vst [vmem:[#allocation7] sm:$0xff] %v63_v23 }
  0x3b   :  { %66 = vst [vmem:[#allocation7 + $0x8] sm:$0xff] %v64_v24 }
  0x3c   :  { %137 = shalt.err (!%p134_p1)
}
  0x3d   :  { %s138_s11 = scalar_lea.hbm %s210_s2, 256 }
  0x3e   :  { %p139_p2 = scmp.ne.s32.totalorder %s210_s2, %s138_s11  ;;  %p142_p3 = scmp.lt.u32.totalorder %s138_s11, %s210_s2 }
  0x40   :  { %p144_p4 = pnand %p142_p3, %p139_p2 }
  0x42   :  { %147 = shalt.err (!%p144_p4)
}
  0x43   :  { %76 = dma.vmem_to_hbm [thread:$0]  %s74_s7, 256, %s210_s2, [#allocation4]  }
  0x44   :  { %152 = dma.done.wait [#allocation4], 256  }
  0x45   :  { %153 = vsyncadd [#allocation4], 4294967040 }
  0x46   :  { %80 = vsyncpa [#allocation3], 1 }
  0x47   :  { %81 = vsyncpa [#allocation4], 1 }
  0x48   :  { %82 = vsyncpa [#allocation5], 1 }

</bundles_post_ra>
